<compile_context>
chip_gen: v6e
topology: v6e:2x2x1
jax: 0.10.0
libtpu: 0.0.40
codegen_flags: <defaults>
</compile_context>

<pallas_src>
import numpy as np
import jax
import jax.numpy as jnp
from jax.experimental import pallas as pl
from jax.experimental.pallas import tpu as pltpu

_LANE = 128
_SUBLANE = 8


# ----------------------------- Pallas kernel --------------------------------

def embeddings_kernel(num_mem_ref,                        # SMEM (1,)  int32
                      name_ids_ref, head_ids_ref,         # VMEM (m_pad, 1) int32
                      rel_ids_ref, tail_ids_ref,          # (vocab offsets pre-applied)
                      w_ref,                              # VMEM (k_pad, n_pad) f32
                      pos_ref,                            # VMEM (m_pad, n_pad) f32
                      out_ref):                           # VMEM (m_pad, n_pad) f32
    m_pad = out_ref.shape[0]
    k_pad = w_ref.shape[0]
    num_mem = num_mem_ref[0]

    # Single one-hot LHS over the combined vocab. Id ranges are disjoint (offsets
    # applied in the wrapper), so each valid row has exactly 4 ones:
    # name, head, relation, tail. Padded rows carry id = -1 -> no match.
    iota_v = jax.lax.broadcasted_iota(jnp.int32, (m_pad, k_pad), 1)
    match = ((iota_v == name_ids_ref[...]) |
             (iota_v == head_ids_ref[...]) |
             (iota_v == rel_ids_ref[...]) |
             (iota_v == tail_ids_ref[...]))

    # Fold row validity (i < num_mem) into the one-hot instead of masking the
    # full-width output tile.
    row_iota = jax.lax.broadcasted_iota(jnp.int32, (m_pad, k_pad), 0)
    onehot = (match & (row_iota < num_mem)).astype(jnp.float32)

    # One MXU pass: gathers, name+head / name+tail adds, and concat, fused.
    out_ref[...] = (
        jnp.dot(onehot, w_ref[...], preferred_element_type=jnp.float32)
        + pos_ref[...])


# ------------------------------ Wrapper --------------------------------------

def _round_up(x: int, m: int) -> int:
    return ((x + m - 1) // m) * m


def embeddings_forward(num_mem, name_ids, head_ids, rel_ids, tail_ids,
                       names_w, heads_w, rels_w, tails_w, pos_w):
    """Fused episodic-memory embedding forward.

    num_mem:  (1,) int32   number of filled memory entries
    *_ids:    (num_rows, 1) int32 index arrays (rows >= num_mem are ignored)
    *_w:      (vocab, D) f32 embedding tables
    pos_w:    (num_rows, 3*D) f32 positional embeddings
    """
    num_rows, num_cols = pos_w.shape
    D = names_w.shape[1]
    n_names, n_heads = names_w.shape[0], heads_w.shape[0]
    n_rels, n_tails = rels_w.shape[0], tails_w.shape[0]
    total_vocab = n_names + n_heads + n_rels + n_tails

    # Lane-dense / sublane-aligned padded shapes.
    m_pad = _round_up(num_rows, _SUBLANE)
    n_pad = _round_up(num_cols, _LANE)
    k_pad = _round_up(total_vocab, _LANE)

    # Combined block-structured weight matrix.
    o_names = 0
    o_heads = n_names
    o_rels = n_names + n_heads
    o_tails = n_names + n_heads + n_rels
    w = jnp.zeros((k_pad, n_pad), jnp.float32)
    w = w.at[o_names:o_names + n_names, 0:D].set(names_w)
    w = w.at[o_names:o_names + n_names, 2 * D:3 * D].set(names_w)
    w = w.at[o_heads:o_heads + n_heads, 0:D].set(heads_w)
    w = w.at[o_rels:o_rels + n_rels, D:2 * D].set(rels_w)
    w = w.at[o_tails:o_tails + n_tails, 2 * D:3 * D].set(tails_w)

    # Pad positional embeddings to the lane-dense output shape.
    pos_p = jnp.zeros((m_pad, n_pad), jnp.float32)
    pos_p = pos_p.at[:num_rows, :num_cols].set(pos_w)

    def pad_ids(ids, off):
        # Padded rows get -1 (never matches the non-negative vocab iota).
        p = jnp.full((m_pad, 1), -1, jnp.int32)
        return p.at[:num_rows, :].set(ids.astype(jnp.int32) + off)

    name_p = pad_ids(name_ids, o_names)
    head_p = pad_ids(head_ids, o_heads)
    rel_p = pad_ids(rel_ids, o_rels)
    tail_p = pad_ids(tail_ids, o_tails)

    vmem = pl.BlockSpec(memory_space=pltpu.MemorySpace.VMEM)
    smem = pl.BlockSpec(memory_space=pltpu.MemorySpace.SMEM)

    cost = pl.CostEstimate(
        flops=2 * m_pad * k_pad * n_pad,
        transcendentals=0,
        bytes_accessed=int(4 * (w.size + pos_p.size + m_pad * n_pad)
                           + 4 * 4 * m_pad),
    )

    out_p = pl.pallas_call(
        embeddings_kernel,
        out_shape=jax.ShapeDtypeStruct((m_pad, n_pad), jnp.float32),
        in_specs=[smem] + [vmem] * 6,
        out_specs=vmem,
        cost_estimate=cost,
        # Single grid point; tables + padded tiles are tiny and fit the default
        # scoped VMEM on v5e/v6e/v7x. TODO(synk): at realistic (large) vocab /
        # row counts, switch to PrefetchScalarGridSpec row-gather with
        # HBM-resident tables (memory_space=pl.ANY), sized per generation.
    )(num_mem, name_p, head_p, rel_p, tail_p, w, pos_p)

    return out_p[:num_rows, :num_cols]


# ------------------------------ References -----------------------------------

def create_sinusoidal_embeddings(n_pos: int, dim: int) -> np.ndarray:
    """Same math as the PyTorch helper (Attention-is-all-you-need sinusoids)."""
    position_enc = np.array(
        [[pos / np.power(10000, 2 * (j // 2) / dim) for j in range(dim)]
         for pos in range(n_pos)])
    out = np.zeros((n_pos, dim), dtype=np.float32)
    out[:, 0::2] = np.sin(position_enc[:, 0::2])
    out[:, 1::2] = np.cos(position_enc[:, 1::2])
    return out


def reference_forward(num_mem, name_ids, head_ids, rel_ids, tail_ids,
                      names_w, heads_w, rels_w, tails_w, pos_w):
    """Pure-numpy reference mirroring Embeddings.forward('episodic_memory_manage')."""
    num_rows, num_cols = pos_w.shape
    x = np.zeros((num_rows, num_cols), dtype=np.float32)
    for i in range(num_mem):
        head = names_w[name_ids[i]] + heads_w[head_ids[i]]
        rel = rels_w[rel_ids[i]]
        tail = names_w[name_ids[i]] + tails_w[tail_ids[i]]
        x[i] = np.concatenate([head, rel, tail])
    x += pos_w
    return x


if __name__ == "__main__":
    # Small shapes consistent with the module (embedding_dim ~ 4-8, small table)
    embedding_dim = 8
    num_rows = 8
    num_cols = 3 * embedding_dim
    num_mem = 5                      # number of filled memory entries
    n_heads, n_rels, n_tails, n_names, n_specials = 6, 4, 7, 5, 2

    key = jax.random.PRNGKey(0)
    k_h, k_r, k_t, k_n, k_s, k1, k2, k3, k4 = jax.random.split(key, 9)

    # nn.Embedding default init: N(0, 1)
    heads_w = jax.random.normal(k_h, (n_heads, embedding_dim), jnp.float32)
    rels_w = jax.random.normal(k_r, (n_rels, embedding_dim), jnp.float32)
    tails_w = jax.random.normal(k_t, (n_tails, embedding_dim), jnp.float32)
    names_w = jax.random.normal(k_n, (n_names, embedding_dim), jnp.float32)
    specials_w = jax.random.normal(k_s, (n_specials, embedding_dim), jnp.float32)
    specials_w = specials_w.at[0].set(0.0)   # padding_idx=0 (unused in this policy path)

    pos_w = jnp.asarray(create_sinusoidal_embeddings(num_rows, num_cols))

    # Deterministic "episodic memory entries" as index arrays, padded to num_rows.
    name_ids = jax.random.randint(k1, (num_rows, 1), 0, n_names, jnp.int32)
    head_ids = jax.random.randint(k2, (num_rows, 1), 0, n_heads, jnp.int32)
    rel_ids = jax.random.randint(k3, (num_rows, 1), 0, n_rels, jnp.int32)
    tail_ids = jax.random.randint(k4, (num_rows, 1), 0, n_tails, jnp.int32)
    num_mem_arr = jnp.array([num_mem], dtype=jnp.int32)

    out = embeddings_forward(num_mem_arr, name_ids, head_ids, rel_ids, tail_ids,
                             names_w, heads_w, rels_w, tails_w, pos_w)
    out = jax.block_until_ready(out)

    ref = reference_forward(num_mem,
                            np.asarray(name_ids)[:, 0], np.asarray(head_ids)[:, 0],
                            np.asarray(rel_ids)[:, 0], np.asarray(tail_ids)[:, 0],
                            np.asarray(names_w), np.asarray(heads_w),
                            np.asarray(rels_w), np.asarray(tails_w),
                            np.asarray(pos_w))
    np.testing.assert_allclose(np.asarray(out), ref, rtol=1e-5, atol=1e-5)
    print("KERNEL_OK")
</pallas_src>

<mosaic_0001>
module attributes {stable_mosaic.version = 11 : i64} {
  func.func @embeddings_kernel(%arg0: memref<1xi32, #tpu.memory_space<smem>>, %arg1: memref<8x1xi32, #tpu.memory_space<vmem>>, %arg2: memref<8x1xi32, #tpu.memory_space<vmem>>, %arg3: memref<8x1xi32, #tpu.memory_space<vmem>>, %arg4: memref<8x1xi32, #tpu.memory_space<vmem>>, %arg5: memref<128x128xf32, #tpu.memory_space<vmem>>, %arg6: memref<8x128xf32, #tpu.memory_space<vmem>>, %arg7: memref<8x128xf32, #tpu.memory_space<vmem>>) attributes {dimension_semantics = [], scalar_prefetch = 0 : i64, scratch_operands = 0 : i64, tpu.core_type = #tpu.core_type<tc>} {
    %c0 = arith.constant 0 : index
    %0 = memref.load %arg0[%c0] : memref<1xi32, #tpu.memory_space<smem>>
    %1 = tpu.iota {dimensions = array<i32: 1>} : vector<8x128xi32>
    %c0_0 = arith.constant 0 : index
    %c0_1 = arith.constant 0 : index
    %2 = vector.load %arg1[%c0_0, %c0_1] : memref<8x1xi32, #tpu.memory_space<vmem>>, vector<8x1xi32>
    %3 = vector.broadcast %2 : vector<8x1xi32> to vector<8x128xi32>
    %4 = arith.cmpi eq, %1, %3 : vector<8x128xi32>
    %c0_2 = arith.constant 0 : index
    %c0_3 = arith.constant 0 : index
    %5 = vector.load %arg2[%c0_2, %c0_3] : memref<8x1xi32, #tpu.memory_space<vmem>>, vector<8x1xi32>
    %6 = vector.broadcast %5 : vector<8x1xi32> to vector<8x128xi32>
    %7 = arith.cmpi eq, %1, %6 : vector<8x128xi32>
    %8 = arith.ori %4, %7 : vector<8x128xi1>
    %c0_4 = arith.constant 0 : index
    %c0_5 = arith.constant 0 : index
    %9 = vector.load %arg3[%c0_4, %c0_5] : memref<8x1xi32, #tpu.memory_space<vmem>>, vector<8x1xi32>
    %10 = vector.broadcast %9 : vector<8x1xi32> to vector<8x128xi32>
    %11 = arith.cmpi eq, %1, %10 : vector<8x128xi32>
    %12 = arith.ori %8, %11 : vector<8x128xi1>
    %c0_6 = arith.constant 0 : index
    %c0_7 = arith.constant 0 : index
    %13 = vector.load %arg4[%c0_6, %c0_7] : memref<8x1xi32, #tpu.memory_space<vmem>>, vector<8x1xi32>
    %14 = vector.broadcast %13 : vector<8x1xi32> to vector<8x128xi32>
    %15 = arith.cmpi eq, %1, %14 : vector<8x128xi32>
    %16 = arith.ori %12, %15 : vector<8x128xi1>
    %17 = tpu.iota {dimensions = array<i32: 0>} : vector<8x128xi32>
    %18 = vector.broadcast %0 : i32 to vector<8x128xi32>
    %19 = arith.cmpi slt, %17, %18 : vector<8x128xi32>
    %20 = arith.andi %16, %19 : vector<8x128xi1>
    %21 = arith.extui %20 : vector<8x128xi1> to vector<8x128xi32>
    %22 = arith.sitofp %21 : vector<8x128xi32> to vector<8x128xf32>
    %c0_8 = arith.constant 0 : index
    %c0_9 = arith.constant 0 : index
    %23 = vector.load %arg5[%c0_8, %c0_9] : memref<128x128xf32, #tpu.memory_space<vmem>>, vector<128x128xf32>
    %cst = arith.constant dense<0.000000e+00> : vector<8x128xf32>
    %24 = tpu.matmul %22, %23, %cst {dimension_numbers = #tpu.dot_dimension_numbers<[1], [0], [0], [1], [0, 0, 1, 1], [], []>} : vector<8x128xf32>, vector<128x128xf32>, vector<8x128xf32> -> vector<8x128xf32>
    %c0_10 = arith.constant 0 : index
    %c0_11 = arith.constant 0 : index
    %25 = vector.load %arg6[%c0_10, %c0_11] : memref<8x128xf32, #tpu.memory_space<vmem>>, vector<8x128xf32>
    %26 = arith.addf %24, %25 : vector<8x128xf32>
    %c0_12 = arith.constant 0 : index
    %c0_13 = arith.constant 0 : index
    %27 = vector.load %arg7[%c0_12, %c0_13] : memref<8x128xf32, #tpu.memory_space<vmem>>, vector<8x128xf32>
    tpu.vector_store %arg7[%c0_12, %c0_13], %26 {strides = array<i32>} : memref<8x128xf32, #tpu.memory_space<vmem>>, vector<8x128xf32>,
    return
  }
}

</mosaic_0001>

<bundles_post_ra>
// kernel: tpu_custom_call.1
= control target key start
LH: loop header
LB: loop body
LE: loop exit
PB: predicated region body
PF: predicated region fallthrough
CT: control target
= control target key end

     0   :  { %13 = vsyncpa [#allocation4], 0  ;;  %s373_s0 = inlined_call_operand.<no memory space> [shape: s32[1], index: 0, kind: input, shape index: {}]   ;;  %s374_s1 = inlined_call_operand.vmem [shape: s32[8,1], index: 1, kind: input, shape index: {}]   ;;  %s375_s2 = inlined_call_operand.vmem [shape: s32[8,1], index: 2, kind: input, shape index: {}]   ;;  %s376_s3 = inlined_call_operand.vmem [shape: s32[8,1], index: 3, kind: input, shape index: {}]   ;;  %s377_s4 = inlined_call_operand.vmem [shape: s32[8,1], index: 4, kind: input, shape index: {}]   ;;  %s378_s5 = inlined_call_operand.hbm [shape: f32[128,128], index: 5, kind: input, shape index: {}]   ;;  %s379_s6 = inlined_call_operand.vmem [shape: f32[8,128], index: 6, kind: input, shape index: {}]   ;;  %s380_s7 = inlined_call_operand.hbm [shape: f32[8,128], index: 7, kind: output, shape index: {}]  }
   0x1   :  { %14 = vsyncpa [#allocation5], 0  ;;  %s284_s24 = smov [#allocation3]  }
   0x2   :  { %s30_s25 = sshll.u32 %s284_s24, 4  ;;  %s31_s25 = int_to_ptr.vmem [resolvable:$true] %s30_s25 }
   0x3   :  { %s248_s26 = scalar_lea.vmem %s31_s25, 2048  ;;  %p253_p1 = scmp.lt.s32.totalorder %s31_s25, %s31_s25 }
   0x4   :  { %p249_p0 = scmp.ne.s32.totalorder %s31_s25, %s248_s26  ;;  %p254_p2 = scmp.lt.s32.totalorder %s248_s26, %s248_s26 }
   0x6   :  { %p255_p3 = por %p254_p2, %p253_p1 }
   0x8   :  { %p256_p4 = pnand %p255_p3, %p249_p0 }
   0xa   :  { %259 = shalt.err (!%p256_p4)
}
   0xb   :  { %s285_s27 = smov 128   ;;  %s286_s28 = smov 8  }
   0xc   :  { %36 = dma.hbm_to_vmem [thread:$0]  %s378_s5, 2048, %s31_s25, [#allocation4], %s285_s27, %s285_s27, %s286_s28  }
   0xd   :  { %280 = dma.done.wait [#allocation4], 2048  }
   0xe   :  { %281 = vsyncadd [#allocation4], 4294965248  ;;  %v287_v0 = vmov 0   ;;  %v288_v1 = vmov 0.0   ;;  %v56_v2 = vld [vmem:[%s376_s3] sm:$0xff]  ;;  %v90_v4 = vld [vmem:[#allocation3 + $0x78] sm:$0xff]  ;;  %v43_v22 = vlaneseq  ;;  %v70_v27 = vstv %s373_s0 }
   0xf   :  { %239 = vset.pattern.permute.xlu1 %v287_v0  ;;  %238 = vset.pattern.permute.xlu0 %v287_v0  ;;  %v45_v3 = vld [vmem:[%s374_s1] sm:$0xff]  ;;  %v89_v5 = vld [vmem:[#allocation3 + $0x70] sm:$0xff]  ;;  %v88_v8 = vld [vmem:[#allocation3 + $0x68] sm:$0xff]  ;;  %vm289_vm0 = vmmov 0   ;;  %s290_s15 = smov [#allocation6]  }
  0x10   :  { %196 = vmatprep.subr.mxu0 %v288_v1  ;;  %58 = vperm.xlu1 %239, %v56_v2   ;;  %v62_v6 = vld [vmem:[%s377_s4] sm:$0xff]  ;;  %v86_v10 = vld [vmem:[#allocation3 + $0x58] sm:$0xff]  ;;  %v85_v11 = vld [vmem:[#allocation3 + $0x50] sm:$0xff]  ;;  %v44_v25 = vand.u32 127, %v43_v22  ;;  %v69_v26 = vshrl.u32 %v43_v22, 7  ;;  %s169_s0 = sshll.u32 %s290_s15, 4  ;;  %s170_s0 = int_to_ptr.vmem [resolvable:$true] %s169_s0 }
  0x11   :  { %47 = vperm.xlu0 %238, %v45_v3   ;;  %v50_v7 = vld [vmem:[%s375_s2] sm:$0xff]  ;;  %197 = vmatpush3.msra.mxu0 %v90_v4  ;;  %v84_v12 = vld [vmem:[#allocation3 + $0x48] sm:$0xff]  ;;  %v82_v14 = vld [vmem:[#allocation3 + $0x38] sm:$0xff]  ;;  %s260_s16 = scalar_lea.vmem %s170_s0, 128  ;;  %p265_p6 = scmp.lt.s32.totalorder %s170_s0, %s170_s0 }
  0x12   :  { %198 = vmatprep.subr.mxu0 %v288_v1  ;;  %v87_v9 = vld [vmem:[#allocation3 + $0x60] sm:$0xff]  ;;  %228 = vmatprep.mubr.msk.f32.mxu0 %vm289_vm0, %v288_v1  ;;  %v81_v15 = vld [vmem:[#allocation3 + $0x30] sm:$0xff]  ;;  %v80_v16 = vld [vmem:[#allocation3 + $0x28] sm:$0xff]  ;;  %vm71_vm5 = vcmp.lt.s32.totalorder %v69_v26, %v70_v27  ;;  %p261_p5 = scmp.ne.s32.totalorder %s170_s0, %s260_s16  ;;  %p266_p7 = scmp.lt.s32.totalorder %s260_s16, %s260_s16 }
  0x13   :  { %199 = vmatpush3.msra.mxu0 %v89_v5  ;;  %v83_v13 = vld [vmem:[#allocation3 + $0x40] sm:$0xff]  ;;  %v78_v18 = vld [vmem:[#allocation3 + $0x18] sm:$0xff]  ;;  %v77_v19 = vld [vmem:[#allocation3 + $0x10] sm:$0xff] }
  0x14   :  { %64 = vperm.xlu1 %239, %v62_v6   ;;  %200 = vmatprep.subr.mxu0 %v288_v1  ;;  %v79_v17 = vld [vmem:[#allocation3 + $0x20] sm:$0xff]  ;;  %v76_v20 = vld [vmem:[#allocation3 + $0x8] sm:$0xff]  ;;  %p267_p8 = por %p266_p7, %p265_p6 }
  0x15   :  { %52 = vperm.xlu0 %238, %v50_v7   ;;  %201 = vmatpush3.msra.mxu0 %v88_v8  ;;  %v75_v21 = vld [vmem:[#allocation3] sm:$0xff] }
  0x16   :  { %202 = vmatprep.subr.mxu0 %v288_v1  ;;  %v91_v31 = vld [vmem:[%s379_s6] sm:$0xff]  ;;  %p268_p9 = pnand %p267_p8, %p261_p5 }
  0x17   :  { %203 = vmatpush3.msra.mxu0 %v87_v9 }
  0x18   :  { %204 = vmatprep.subr.mxu0 %v288_v1 }
  0x19   :  { %205 = vmatpush3.msra.mxu0 %v86_v10 }
  0x1a   :  { %206 = vmatprep.subr.mxu0 %v288_v1 }
  0x1b   :  { %207 = vmatpush3.msra.mxu0 %v85_v11 }
  0x1c   :  { %208 = vmatprep.subr.mxu0 %v288_v1 }
  0x1d   :  { %209 = vmatpush3.msra.mxu0 %v84_v12 }
  0x1e   :  { %210 = vmatprep.subr.mxu0 %v288_v1 }
  0x1f   :  { %211 = vmatpush3.msra.mxu0 %v83_v13 }
  0x20   :  { %212 = vmatprep.subr.mxu0 %v288_v1 }
  0x21   :  { %213 = vmatpush3.msra.mxu0 %v82_v14 }
  0x22   :  { %214 = vmatprep.subr.mxu0 %v288_v1 }
  0x23   :  { %215 = vmatpush3.msra.mxu0 %v81_v15 }
  0x24   :  { %216 = vmatprep.subr.mxu0 %v288_v1 }
  0x25   :  { %217 = vmatpush3.msra.mxu0 %v80_v16 }
  0x26   :  { %218 = vmatprep.subr.mxu0 %v288_v1 }
  0x27   :  { %219 = vmatpush3.msra.mxu0 %v79_v17 }
  0x28   :  { %220 = vmatprep.subr.mxu0 %v288_v1 }
  0x29   :  { %221 = vmatpush3.msra.mxu0 %v78_v18 }
  0x2a   :  { %222 = vmatprep.subr.mxu0 %v288_v1 }
  0x2b   :  { %223 = vmatpush3.msra.mxu0 %v77_v19 }
  0x2c   :  { %224 = vmatprep.subr.mxu0 %v288_v1 }
  0x2d   :  { %225 = vmatpush3.msra.mxu0 %v76_v20 }
  0x2e   :  { %226 = vmatprep.subr.mxu0 %v288_v1 }
  0x2f   :  { %227 = vmatpush3.msra.mxu0 %v75_v21 }
  0x8b   :  { %v59_v23 = vpop.permute.xlu1 %58 }
  0x8c   :  { %v48_v24 = vpop.permute.xlu0 %47  ;;  %vm60_vm3 = vcmp.eq.s32.totalorder %v44_v25, %v59_v23 }
  0x8d   :  { %vm49_vm1 = vcmp.eq.s32.totalorder %v44_v25, %v48_v24 }
  0x8f   :  { %v65_v28 = vpop.permute.xlu1 %64 }
  0x90   :  { %v53_v29 = vpop.permute.xlu0 %52  ;;  %vm66_vm6 = vcmp.eq.s32.totalorder %v44_v25, %v65_v28 }
  0x91   :  { %vm54_vm2 = vcmp.eq.s32.totalorder %v44_v25, %v53_v29 }
  0x92   :  { %vm55_vm4 = vmor %vm49_vm1, %vm54_vm2 }
  0x93   :  { %vm61_vm7 = vmor %vm55_vm4, %vm60_vm3 }
  0x94   :  { %vm67_vm8 = vmor %vm61_vm7, %vm66_vm6 }
  0x95   :  { %vm72_vm9 = vmand %vm67_vm8, %vm71_vm5 }
  0x96   :  { %v178_v30 = vsel %vm72_vm9, 1.0, %v288_v1 }
  0x97   :  { %229 = vmatmul.mubr.f32.vlgmr.msra.gmra.mxu0 %v178_v30 }
 0x157   :  { %v158_v32 = vpop.f32.mrf.mxu0 }
 0x158   :  { %v159_v33 = vadd.f32 %v158_v32, %v91_v31 }
 0x159   :  { %v230_v34 = vpop.f32.mrf.mxu0 }
 0x15a   :  { %162 = vst [vmem:[#allocation6] sm:$0xff] %v159_v33 }
 0x15b   :  { %271 = shalt.err (!%p268_p9)
}
 0x15c   :  { %172 = dma.vmem_to_hbm [thread:$0]  %s170_s0, 128, %s380_s7, [#allocation5]  }
 0x15d   :  { %282 = dma.done.wait [#allocation5], 128  }
 0x15e   :  { %283 = vsyncadd [#allocation5], 4294967168 }
 0x15f   :  { %176 = vsyncpa [#allocation4], 1 }
 0x160   :  { %177 = vsyncpa [#allocation5], 1 }

</bundles_post_ra>
